<compile_context>
chip_gen: v6e
topology: v6e:2x2x1
jax: 0.10.0
libtpu: 0.0.40
codegen_flags: <defaults>
</compile_context>

<pallas_src>
import functools

import jax
import jax.numpy as jnp
from jax.experimental import pallas as pl
from jax.experimental.pallas import tpu as pltpu


def _rmsnorm_kernel(x_ref, w_ref, o_ref, *, eps: float):
    # x_ref: (row_tile, dim), w_ref: (1, dim), o_ref: (row_tile, dim)
    x = x_ref[...].astype(jnp.float32)
    ms = jnp.mean(x * x, axis=-1, keepdims=True)          # (row_tile, 1), XLU reduce
    inv = jax.lax.rsqrt(ms + eps)                          # EUP rsqrt
    out = x * inv * w_ref[...].astype(jnp.float32)         # weight broadcast over rows
    o_ref[...] = out.astype(o_ref.dtype)                   # .type_as(x)


def _choose_row_tile(rows: int, dim: int, itemsize: int) -> int:
    """Largest row tile whose per-grid-step VMEM footprint stays ~<=24 MiB.

    Live VMEM per step ~= double-buffered (in + out) tiles in x.dtype plus
    ~2 f32 temporaries of the tile:
        bytes ~= row_tile * dim * (4*itemsize + 8)
    24 MiB keeps headroom on v7x (64 MiB VMEM) and fits the raised scoped
    limit on v5e/v6e while being large enough to amortize the ~0.35us/step
    grid overhead (mem-bound kernels plateau near the HBM roofline by
    512-1024 rows).
    """
    budget = 24 << 20
    per_row = max(1, dim * (4 * itemsize + 8))
    t = max(1, budget // per_row)
    t = min(t, 1024)                     # diminishing returns beyond ~1K rows
    if t >= rows:
        return rows                      # single block; full-dim block is always legal
    t = (t // 16) * 16                   # align to bf16 sublane pack (also multiple of 8)
    return max(t, 8)


def rmsnorm(x: jax.Array, weight: jax.Array, eps: float = 1e-6,
            row_tile: int | None = None) -> jax.Array:
    """RMSNorm over the last axis of x, scaled by weight (shape (dim,))."""
    orig_shape = x.shape
    dim = orig_shape[-1]
    assert weight.shape == (dim,)

    x2d = x.reshape(-1, dim)
    rows = x2d.shape[0]

    if row_tile is None:
        row_tile = _choose_row_tile(rows, dim, x2d.dtype.itemsize)
    row_tile = min(row_tile, rows)

    w2d = weight.reshape(1, dim)

    grid = (pl.cdiv(rows, row_tile),)    # partial last block handled by Pallas
                                         # (reads of the overhang are unused rows,
                                         #  writes there are masked out)

    out2d = pl.pallas_call(
        functools.partial(_rmsnorm_kernel, eps=eps),
        out_shape=jax.ShapeDtypeStruct((rows, dim), x.dtype),
        grid_spec=pltpu.PrefetchScalarGridSpec(
            num_scalar_prefetch=0,
            grid=grid,
            in_specs=[
                pl.BlockSpec((row_tile, dim), lambda i: (i, 0)),
                pl.BlockSpec((1, dim), lambda i: (0, 0)),
            ],
            out_specs=pl.BlockSpec((row_tile, dim), lambda i: (i, 0)),
        ),
        compiler_params=pltpu.CompilerParams(
            dimension_semantics=("parallel",),     # shard rows across TCs on v7x
            vmem_limit_bytes=48 << 20,             # above v5e's 16 MiB default,
                                                   # below v7x's 64 MiB physical
        ),
    )(x2d, w2d)

    return out2d.reshape(orig_shape)


def rmsnorm_ref(x, weight, eps=1e-6):
    xf = x.astype(jnp.float32)
    inv = jax.lax.rsqrt(jnp.mean(xf * xf, axis=-1, keepdims=True) + eps)
    return (xf * inv * weight.astype(jnp.float32)).astype(x.dtype)


if __name__ == "__main__":
    key = jax.random.PRNGKey(0)

    # Deterministic parameter init (module init is ones; perturb slightly so
    # the scale actually matters in the check).
    def make_weight(dim):
        return jnp.ones((dim,), dtype=jnp.float32) + 0.01 * jnp.arange(
            dim, dtype=jnp.float32)

    # Case 1: small shape, lane-dense hidden dim (multiple of 128), one block.
    batch, seq, dim = 2, 8, 128
    x = jax.random.normal(key, (batch, seq, dim), dtype=jnp.bfloat16)
    w = make_weight(dim)
    out = jax.block_until_ready(rmsnorm(x, w, eps=1e-6))
    ref = rmsnorm_ref(x, w, eps=1e-6)
    assert out.shape == x.shape and out.dtype == x.dtype
    assert jnp.allclose(out.astype(jnp.float32), ref.astype(jnp.float32),
                        atol=1e-2, rtol=1e-2)

    # Case 2: rows not a multiple of the tile -> exercises the masked partial
    # last block path (no wrapper-side padding copies anymore).
    x2 = jax.random.normal(jax.random.PRNGKey(1), (3, 5, dim), dtype=jnp.bfloat16)
    out2 = jax.block_until_ready(rmsnorm(x2, w, eps=1e-6, row_tile=8))
    ref2 = rmsnorm_ref(x2, w, eps=1e-6)
    assert out2.shape == x2.shape and out2.dtype == x2.dtype
    assert jnp.allclose(out2.astype(jnp.float32), ref2.astype(jnp.float32),
                        atol=1e-2, rtol=1e-2)

    print("KERNEL_OK")
</pallas_src>

<mosaic_0001>
module attributes {stable_mosaic.version = 11 : i64} {
  func.func @_rmsnorm_kernel(%arg0: i32, %arg1: memref<16x128xbf16, #tpu.memory_space<vmem>>, %arg2: memref<1x128xf32, #tpu.memory_space<vmem>>, %arg3: memref<16x128xbf16, #tpu.memory_space<vmem>>) attributes {dimension_semantics = [#tpu.dimension_semantics<parallel>], iteration_bounds = array<i64: 1>, scalar_prefetch = 0 : i64, scratch_operands = 0 : i64, tpu.core_type = #tpu.core_type<tc>, window_params = [{transform_indices = @transform_0, window_bounds = array<i64: 16, 128>}, {pipeline_mode = #tpu.pipeline_mode<synchronous>, transform_indices = @transform_1, window_bounds = array<i64: 1, 128>}, {transform_indices = @transform_2, window_bounds = array<i64: 16, 128>}]} {
    %c0 = arith.constant 0 : index
    %c0_0 = arith.constant 0 : index
    %0 = vector.load %arg1[%c0, %c0_0] : memref<16x128xbf16, #tpu.memory_space<vmem>>, vector<16x128xbf16>
    %1 = arith.extf %0 : vector<16x128xbf16> to vector<16x128xf32>
    %2 = arith.mulf %1, %1 : vector<16x128xf32>
    %cst = arith.constant dense<0.000000e+00> : vector<16xf32>
    %3 = vector.multi_reduction <add>, %2, %cst [1] : vector<16x128xf32> to vector<16xf32>
    %4 = vector.shape_cast %3 : vector<16xf32> to vector<16x1xf32>
    %cst_1 = arith.constant 1.280000e+02 : f32
    %5 = vector.broadcast %cst_1 : f32 to vector<16x1xf32>
    %6 = arith.divf %4, %5 : vector<16x1xf32>
    %cst_2 = arith.constant 9.99999997E-7 : f32
    %7 = vector.broadcast %cst_2 : f32 to vector<16x1xf32>
    %8 = arith.addf %6, %7 : vector<16x1xf32>
    %9 = math.rsqrt %8 : vector<16x1xf32>
    %10 = vector.broadcast %9 : vector<16x1xf32> to vector<16x128xf32>
    %11 = arith.mulf %1, %10 : vector<16x128xf32>
    %c0_3 = arith.constant 0 : index
    %c0_4 = arith.constant 0 : index
    %12 = vector.load %arg2[%c0_3, %c0_4] : memref<1x128xf32, #tpu.memory_space<vmem>>, vector<1x128xf32>
    %13 = vector.broadcast %12 : vector<1x128xf32> to vector<16x128xf32>
    %14 = arith.mulf %11, %13 : vector<16x128xf32>
    %15 = arith.truncf %14 : vector<16x128xf32> to vector<16x128xbf16>
    %c0_5 = arith.constant 0 : index
    %c0_6 = arith.constant 0 : index
    %16 = vector.load %arg3[%c0_5, %c0_6] : memref<16x128xbf16, #tpu.memory_space<vmem>>, vector<16x128xbf16>
    tpu.vector_store %arg3[%c0_5, %c0_6], %15 {strides = array<i32>} : memref<16x128xbf16, #tpu.memory_space<vmem>>, vector<16x128xbf16>,
    return
  }
  func.func @transform_0(%arg0: i32) -> (i32, i32) {
    %c0_i32 = arith.constant 0 : i32
    %c0_i32_0 = arith.constant 0 : i32
    return %arg0, %c0_i32 : i32, i32
  }
  func.func @transform_1(%arg0: i32) -> (i32, i32) {
    %c0_i32 = arith.constant 0 : i32
    %c0_i32_0 = arith.constant 0 : i32
    %c0_i32_1 = arith.constant 0 : i32
    return %c0_i32, %c0_i32_0 : i32, i32
  }
  func.func @transform_2(%arg0: i32) -> (i32, i32) {
    %c0_i32 = arith.constant 0 : i32
    %c0_i32_0 = arith.constant 0 : i32
    return %arg0, %c0_i32 : i32, i32
  }
}

</mosaic_0001>

<bundles_post_ra>
// kernel: tpu_custom_call.1
= control target key start
LH: loop header
LB: loop body
LE: loop exit
PB: predicated region body
PF: predicated region fallthrough
CT: control target
= control target key end

     0   :  { %7 = vsyncpa [#allocation3], 0  ;;  %s181_s0 = inlined_call_operand.hbm [shape: bf16[16,128], index: 0, kind: input, shape index: {}]   ;;  %s182_s1 = inlined_call_operand.vmem [shape: f32[1,128], index: 1, kind: input, shape index: {}]   ;;  %s183_s2 = inlined_call_operand.hbm [shape: bf16[16,128], index: 2, kind: output, shape index: {}]  }
   0x1   :  { %8 = vsyncpa [#allocation4], 0  ;;  %s147_s9 = smov [#allocation2]  }
   0x2   :  { %s14_s10 = sshll.u32 %s147_s9, 4  ;;  %s15_s10 = int_to_ptr.vmem [resolvable:$true] %s14_s10 }
   0x3   :  { %s111_s11 = scalar_lea.vmem %s15_s10, 128  ;;  %p116_p1 = scmp.lt.s32.totalorder %s15_s10, %s15_s10 }
   0x4   :  { %p112_p0 = scmp.ne.s32.totalorder %s15_s10, %s111_s11  ;;  %p117_p2 = scmp.lt.s32.totalorder %s111_s11, %s111_s11 }
   0x6   :  { %p118_p3 = por %p117_p2, %p116_p1 }
   0x8   :  { %p119_p4 = pnand %p118_p3, %p112_p0 }
   0xa   :  { %122 = shalt.err (!%p119_p4)
}
   0xb   :  { %s148_s12 = smov 64   ;;  %s149_s13 = smov 4  }
   0xc   :  { %20 = dma.hbm_to_vmem [thread:$0]  %s181_s0, 128, %s15_s10, [#allocation3], %s148_s12, %s148_s12, %s149_s13  }
   0xd   :  { %143 = dma.done.wait [#allocation3], 128  }
   0xe   :  { %144 = vsyncadd [#allocation3], 4294967168  ;;  %v87_v0 = vld [vmem:[#allocation2] sm:$0xff]   ;;  %s150_s17 = smov [#allocation5]  }
   0xf   :  { %v88_v1 = vunpack.c.l.bf16 %v87_v0  ;;  %v89_v2 = vunpack.c.h.bf16 %v87_v0  ;;  %v81_v14 = vld [vmem:[%s182_s1] ss:$0 sm:$0xff]  ;;  %s69_s18 = sshll.u32 %s150_s17, 4  ;;  %s70_s18 = int_to_ptr.vmem [resolvable:$true] %s69_s18 }
  0x10   :  { %s123_s19 = scalar_lea.vmem %s70_s18, 128  ;;  %p128_p6 = scmp.lt.s32.totalorder %s70_s18, %s70_s18 }
  0x11   :  { %v30_v3 = vmul.f32 %v88_v1, %v88_v1  ;;  %v31_v4 = vmul.f32 %v89_v2, %v89_v2  ;;  %p124_p5 = scmp.ne.s32.totalorder %s70_s18, %s123_s19  ;;  %p129_p7 = scmp.lt.s32.totalorder %s123_s19, %s123_s19 }
  0x13   :  { %32 = vadd.xlane.f32.xlu0 %v30_v3  ;;  %p130_p8 = por %p129_p7, %p128_p6 }
  0x15   :  { %p131_p9 = pnand %p130_p8, %p124_p5 }
  0x17   :  { %34 = vadd.xlane.f32.xlu0 %v31_v4 }
  0x9c   :  { %v33_v5 = vpop.xlane.xlu0 %32 }
  0x9d   :  { %v37_v6 = vmul.f32 0.0078125, %v33_v5 }
  0x9f   :  { %v39_v7 = vadd.f32 1e-06, %v37_v6 }
  0xa0   :  { %v35_v8 = vpop.xlane.xlu0 %34 }
  0xa1   :  { %99 = vrsqrt.f32 %v39_v7  ;;  %v38_v9 = vmul.f32 0.0078125, %v35_v8 }
  0xa3   :  { %v40_v10 = vadd.f32 1e-06, %v38_v9 }
  0xa5   :  { %101 = vrsqrt.f32 %v40_v10 }
  0xae   :  { %v100_v11 = vpop.eup %99 }
  0xaf   :  { %v43_v12 = vmul.f32 %v100_v11, %v88_v1 }
  0xb1   :  { %v52_v16 = vmul.f32 %v81_v14, %v43_v12 }
  0xb2   :  { %v102_v13 = vpop.eup %101 }
  0xb3   :  { %v44_v15 = vmul.f32 %v102_v13, %v89_v2 }
  0xb5   :  { %v53_v17 = vmul.f32 %v81_v14, %v44_v15 }
  0xb7   :  { %v93_v18 = vpack.c.bf16 %v53_v17, %v52_v16 }
  0xb9   :  { %94 = vst [vmem:[#allocation5] sm:$0xff] %v93_v18  }
  0xba   :  { %134 = shalt.err (!%p131_p9)
}
  0xbb   :  { %75 = dma.vmem_to_hbm [thread:$0]  %s70_s18, 128, %s183_s2, [#allocation4], %s148_s12, %s148_s12, %s149_s13  }
  0xbc   :  { %145 = dma.done.wait [#allocation4], 128  }
  0xbd   :  { %146 = vsyncadd [#allocation4], 4294967168 }
  0xbe   :  { %79 = vsyncpa [#allocation3], 1 }
  0xbf   :  { %80 = vsyncpa [#allocation4], 1 }

</bundles_post_ra>
